<compile_context>
chip_gen: v7x
topology: tpu7x:2x2x1
jax: 0.10.0
libtpu: 0.0.40
codegen_flags: <defaults>
</compile_context>

<pallas_src>
import jax
import jax.numpy as jnp
from jax import lax
from jax.experimental import pallas as pl
from jax.experimental.pallas import tpu as pltpu

# ----- default config values from the PyTorch module -----
TEMPERATURE = 0.07      # contrastive temperature
C_MARGIN = 0.5          # contrastive margin
T_MARGIN = 1.0          # triplet margin (euclidean metric)
GAMMA = 2.0             # focal gamma (kernel specializes the default gamma == 2)
ALPHA = 0.25            # focal alpha
SMOOTHING = 0.1         # label smoothing
W_CONTRASTIVE = 0.1
W_TRIPLET = 0.1
W_FOCAL = 0.4
W_LS = 0.4

# Packed scalar outputs: one lane-dense (1, 128) f32 row, lanes 0..4 hold
# [contrastive, triplet, focal, label_smoothing, total].
OUT_LANES = 128
_STATIC_UNROLL_MAX_B = 16   # static anchor unroll below this, fori_loop above


def _loss_kernel(pred_ref, feat_ref, lab_ref, out_ref):
    pred = pred_ref[...].astype(jnp.float32)     # (B, C)
    feat = feat_ref[...].astype(jnp.float32)     # (B, D)
    lab_col = lab_ref[...]                       # (B, 1) int32, class ids in [0, C)

    B, C = pred.shape
    D = feat.shape[1]
    hp = lax.Precision.HIGHEST

    def full_sum(x):                             # whole-array sum -> (1, 1)
        return jnp.sum(x, keepdims=True)

    # ---------------- one-hot labels (shared by focal / label smoothing) -----
    cls_iota = lax.broadcasted_iota(jnp.int32, (B, C), 1)
    onehot = (cls_iota == lab_col).astype(jnp.float32)           # (B, C)

    # ---------------- label equality matrix (diag included, as in the ref) ---
    # Derived from the one-hot so only ONE label operand is DMA'd and no
    # in-VMEM transpose is needed.  Exact 0/1 result (each row has one 1),
    # so default matmul precision is already exact.
    lab_eq = jnp.einsum('ic,jc->ij', onehot, onehot,
                        preferred_element_type=jnp.float32)      # (B, B)

    # ---------------- single Gram matrix feeds contrastive AND triplet -------
    gram = jnp.einsum('id,jd->ij', feat, feat, precision=hp,
                      preferred_element_type=jnp.float32)        # (B, B) on MXU
    f2 = feat * feat
    sq_col = jnp.sum(f2, axis=1, keepdims=True)                  # (B, 1) ||f_i||^2
    # Row-oriented squared norms directly from f2 (NOT the Gram diagonal):
    # ones(8, D) @ f2.T on the MXU at HIGHEST precision, then a static slice of
    # row 0.  Tiny, exact-to-f32, and survives an anchor-block re-tiling.
    ones_8d = jnp.ones((8, D), jnp.float32)
    sq_row = jnp.einsum('id,jd->ij', ones_8d, f2, precision=hp,
                        preferred_element_type=jnp.float32)[0:1, :]   # (1, B)

    # ---------------- ContrastiveLoss ----------------------------------------
    # sim = normalize(f) @ normalize(f).T  ==  gram rescaled by inverse norms.
    inv_col = lax.rsqrt(jnp.maximum(sq_col, 1e-24))              # EUP rsqrt
    inv_row = lax.rsqrt(jnp.maximum(sq_row, 1e-24))
    sim = gram * inv_col * inv_row                               # (B, B)
    pos_loss = -jnp.log(jnp.exp(sim * lab_eq / TEMPERATURE) + 1e-8)
    neg_loss = jnp.maximum(C_MARGIN - sim * (1.0 - lab_eq), 0.0)
    contrastive = (full_sum(pos_loss) + full_sum(neg_loss)) / (B * B)

    # ---------------- TripletLoss (euclidean cdist) ---------------------------
    d2 = jnp.maximum(sq_col + sq_row - 2.0 * gram, 0.0)
    dist = jnp.sqrt(d2)                                          # (B, B)
    dist_pm = dist + T_MARGIN        # "+ margin" hoisted out of the anchor loop
    pos_mask = lab_eq
    neg_mask = 1.0 - lab_eq

    # Masked pairwise hinge sum == the PyTorch per-anchor (positive, negative)
    # double loop (empty sets contribute 0).  Accumulate in a (B, B) vreg and
    # reduce ONCE at the end.
    if B <= _STATIC_UNROLL_MAX_B:
        # Small B: static unroll with direct column/row slices (dist symmetric:
        # dist[:, i] == dist[i, :], so d_p = dist[i, p] + m, d_n = dist[i, n]).
        acc2d = jnp.zeros((B, B), jnp.float32)
        for i in range(B):
            term = jnp.maximum(dist_pm[:, i:i + 1] - dist[i:i + 1, :], 0.0)
            acc2d = acc2d + term * (pos_mask[:, i:i + 1] * neg_mask[i:i + 1, :])
    else:
        # Larger B: visible loop keeps register pressure flat; column/row of
        # anchor i are extracted with broadcast-compares (no dynamic slices).
        lane_bb = lax.broadcasted_iota(jnp.int32, (B, B), 1)
        sub_bb = lax.broadcasted_iota(jnp.int32, (B, B), 0)

        def body(i, acc):
            col = (lane_bb == i).astype(jnp.float32)
            row = (sub_bb == i).astype(jnp.float32)
            d_p = jnp.sum(dist_pm * col, axis=1, keepdims=True)   # (B, 1)
            d_n = jnp.sum(dist * row, axis=0, keepdims=True)      # (1, B)
            p_m = jnp.sum(pos_mask * col, axis=1, keepdims=True)  # (B, 1)
            n_m = jnp.sum(neg_mask * row, axis=0, keepdims=True)  # (1, B)
            return acc + jnp.maximum(d_p - d_n, 0.0) * (p_m * n_m)

        acc2d = lax.fori_loop(0, B, body, jnp.zeros((B, B), jnp.float32))
    triplet = full_sum(acc2d) / (B + 1e-8)

    # ---------------- shared log-softmax --------------------------------------
    mx = jnp.max(pred, axis=1, keepdims=True)
    z = pred - mx
    lse = jnp.log(jnp.sum(jnp.exp(z), axis=1, keepdims=True))
    log_prob = z - lse                                           # (B, C)

    # ---------------- FocalLoss -----------------------------------------------
    ce = -jnp.sum(onehot * log_prob, axis=1, keepdims=True)      # (B, 1)
    pt = jnp.exp(-ce)
    one_minus_pt = 1.0 - pt
    focal_w = one_minus_pt * one_minus_pt    # (1 - pt) ** GAMMA for default GAMMA == 2.0
    focal = full_sum(ALPHA * focal_w * ce) / B

    # ---------------- LabelSmoothingLoss --------------------------------------
    smooth_target = (SMOOTHING / (C - 1)) * (1.0 - onehot) + (1.0 - SMOOTHING) * onehot
    ls = full_sum(jnp.sum(-smooth_target * log_prob, axis=1, keepdims=True)) / B

    # ---------------- weighted total ------------------------------------------
    total = (W_CONTRASTIVE * contrastive + W_TRIPLET * triplet
             + W_FOCAL * focal + W_LS * ls)

    # ---------------- pack the 5 scalars into one lane-dense store ------------
    lane = lax.broadcasted_iota(jnp.int32, (1, OUT_LANES), 1)
    packed = jnp.zeros((1, OUT_LANES), jnp.float32)
    packed = jnp.where(lane == 0, contrastive, packed)
    packed = jnp.where(lane == 1, triplet, packed)
    packed = jnp.where(lane == 2, focal, packed)
    packed = jnp.where(lane == 3, ls, packed)
    packed = jnp.where(lane == 4, total, packed)
    out_ref[...] = packed


def enhanced_loss(pred, target, features):
    """JAX wrapper: same dict of losses as EnhancedLossModule.forward."""
    B, _ = pred.shape
    lab_col = target.reshape(B, 1).astype(jnp.int32)   # labels passed ONCE

    vmem = pl.BlockSpec(memory_space=pltpu.MemorySpace.VMEM)
    out = pl.pallas_call(
        _loss_kernel,
        out_shape=jax.ShapeDtypeStruct((1, OUT_LANES), jnp.float32),
        in_specs=[vmem, vmem, vmem],
        out_specs=vmem,
    )(pred, features, lab_col)   # no wrapper-side dtype casts; kernel casts

    return {
        'contrastive': out[0, 0],
        'triplet': out[0, 1],
        'focal': out[0, 2],
        'label_smoothing': out[0, 3],
        'total': out[0, 4],
    }


# ---------------- pure-JAX reference (faithful to the PyTorch module) ----------
def reference_loss(pred, target, features):
    pred = pred.astype(jnp.float32)
    features = features.astype(jnp.float32)
    B, C = pred.shape
    labels = target.astype(jnp.int32)
    hp = jax.lax.Precision.HIGHEST   # PyTorch does full-f32 matmuls

    # contrastive
    fn = features / jnp.maximum(
        jnp.linalg.norm(features, axis=1, keepdims=True), 1e-12)
    sim = jnp.matmul(fn, fn.T, precision=hp)
    lab_eq = (labels[:, None] == labels[None, :]).astype(jnp.float32)
    pos_loss = -jnp.log(jnp.exp(sim * lab_eq / TEMPERATURE) + 1e-8)
    neg_loss = jnp.maximum(C_MARGIN - sim * (1 - lab_eq), 0.0)
    contrastive = pos_loss.mean() + neg_loss.mean()

    # triplet
    sq = jnp.sum(features ** 2, axis=1)
    d2 = jnp.maximum(sq[:, None] + sq[None, :]
                     - 2 * jnp.matmul(features, features.T, precision=hp), 0.0)
    dist = jnp.sqrt(d2)
    terms = jnp.maximum(dist[:, :, None] - dist[:, None, :] + T_MARGIN, 0.0)
    mask3 = lab_eq[:, :, None] * (1 - lab_eq)[:, None, :]
    triplet = jnp.sum(terms * mask3) / (B + 1e-8)

    # focal
    log_prob = jax.nn.log_softmax(pred, axis=1)
    ce = -jnp.take_along_axis(log_prob, labels[:, None], axis=1)[:, 0]
    pt = jnp.exp(-ce)
    focal = jnp.mean(ALPHA * (1 - pt) ** GAMMA * ce)

    # label smoothing
    onehot = jax.nn.one_hot(labels, C, dtype=jnp.float32)
    smooth_target = (SMOOTHING / (C - 1)) * (1 - onehot) + (1 - SMOOTHING) * onehot
    ls = jnp.mean(jnp.sum(-smooth_target * log_prob, axis=1))

    total = (W_CONTRASTIVE * contrastive + W_TRIPLET * triplet
             + W_FOCAL * focal + W_LS * ls)
    return {'contrastive': contrastive, 'triplet': triplet, 'focal': focal,
            'label_smoothing': ls, 'total': total}


if __name__ == "__main__":
    key = jax.random.PRNGKey(0)
    k1, k2, k3 = jax.random.split(key, 3)
    B, C, D = 8, 16, 32                      # batch, num_classes, feature dim
    pred = jax.random.normal(k1, (B, C), jnp.float32)
    features = jax.random.normal(k2, (B, D), jnp.float32)
    target = jax.random.randint(k3, (B,), 0, C, jnp.int32)

    out = enhanced_loss(pred, target, features)
    jax.block_until_ready(out)

    ref = reference_loss(pred, target, features)
    # With the Gram / norm matmuls now at HIGHEST precision (and no
    # Gram-diagonal norm reconstruction), the matmul-derived losses only differ
    # from the reference by rounding-path noise, so tolerances are ~10x tighter
    # than before.  focal / label smoothing contain no matmul and match tightly.
    tol = {
        'contrastive':     (1e-3, 1e-4),
        'triplet':         (1e-3, 1e-4),
        'total':           (1e-3, 1e-4),
        'focal':           (1e-4, 1e-5),
        'label_smoothing': (1e-4, 1e-5),
    }
    for k in out:
        rtol, atol = tol[k]
        assert jnp.allclose(out[k], ref[k], rtol=rtol, atol=atol), (k, out[k], ref[k])

    print("KERNEL_OK")
</pallas_src>

<mosaic_0001>
module attributes {stable_mosaic.version = 11 : i64} {
  func.func @_loss_kernel(%arg0: memref<8x16xf32, #tpu.memory_space<vmem>>, %arg1: memref<8x32xf32, #tpu.memory_space<vmem>>, %arg2: memref<8x1xi32, #tpu.memory_space<vmem>>, %arg3: memref<1x128xf32, #tpu.memory_space<vmem>>) attributes {dimension_semantics = [], scalar_prefetch = 0 : i64, scratch_operands = 0 : i64, tpu.core_type = #tpu.core_type<tc>} {
    %c0 = arith.constant 0 : index
    %c0_0 = arith.constant 0 : index
    %0 = vector.load %arg0[%c0, %c0_0] : memref<8x16xf32, #tpu.memory_space<vmem>>, vector<8x16xf32>
    %c0_1 = arith.constant 0 : index
    %c0_2 = arith.constant 0 : index
    %1 = vector.load %arg1[%c0_1, %c0_2] : memref<8x32xf32, #tpu.memory_space<vmem>>, vector<8x32xf32>
    %c0_3 = arith.constant 0 : index
    %c0_4 = arith.constant 0 : index
    %2 = vector.load %arg2[%c0_3, %c0_4] : memref<8x1xi32, #tpu.memory_space<vmem>>, vector<8x1xi32>
    %3 = tpu.iota {dimensions = array<i32: 1>} : vector<8x16xi32>
    %4 = vector.broadcast %2 : vector<8x1xi32> to vector<8x16xi32>
    %5 = arith.cmpi eq, %3, %4 : vector<8x16xi32>
    %6 = arith.extui %5 : vector<8x16xi1> to vector<8x16xi32>
    %7 = arith.sitofp %6 : vector<8x16xi32> to vector<8x16xf32>
    "tpu.trace_start"() <{level = 10 : i32, message = "ic,jc->ij"}> : () -> ()
    %cst = arith.constant dense<0.000000e+00> : vector<8x8xf32>
    %8 = tpu.matmul %7, %7, %cst {dimension_numbers = #tpu.dot_dimension_numbers<[1], [1], [0], [0], [0, 0, 1, 0], [], []>} : vector<8x16xf32>, vector<8x16xf32>, vector<8x8xf32> -> vector<8x8xf32>
    "tpu.trace_stop"() : () -> ()
    "tpu.trace_start"() <{level = 10 : i32, message = "id,jd->ij"}> : () -> ()
    %cst_5 = arith.constant dense<0.000000e+00> : vector<8x8xf32>
    %9 = tpu.matmul %1, %1, %cst_5 {dimension_numbers = #tpu.dot_dimension_numbers<[1], [1], [0], [0], [0, 0, 1, 0], [], []>, precision = #tpu.contract_precision<fp32>} : vector<8x32xf32>, vector<8x32xf32>, vector<8x8xf32> -> vector<8x8xf32>
    "tpu.trace_stop"() : () -> ()
    %10 = arith.mulf %1, %1 : vector<8x32xf32>
    %cst_6 = arith.constant dense<0.000000e+00> : vector<8xf32>
    %11 = vector.multi_reduction <add>, %10, %cst_6 [1] : vector<8x32xf32> to vector<8xf32>
    %12 = vector.shape_cast %11 : vector<8xf32> to vector<8x1xf32>
    %cst_7 = arith.constant 1.000000e+00 : f32
    %13 = vector.broadcast %cst_7 : f32 to vector<8x32xf32>
    "tpu.trace_start"() <{level = 10 : i32, message = "id,jd->ij"}> : () -> ()
    %cst_8 = arith.constant dense<0.000000e+00> : vector<8x8xf32>
    %14 = tpu.matmul %13, %10, %cst_8 {dimension_numbers = #tpu.dot_dimension_numbers<[1], [1], [0], [0], [0, 0, 1, 0], [], []>, precision = #tpu.contract_precision<fp32>} : vector<8x32xf32>, vector<8x32xf32>, vector<8x8xf32> -> vector<8x8xf32>
    "tpu.trace_stop"() : () -> ()
    %15 = vector.extract_strided_slice %14 {offsets = [0, 0], sizes = [1, 8], strides = [1, 1]} : vector<8x8xf32> to vector<1x8xf32>
    %cst_9 = arith.constant 1.000000e-24 : f32
    %16 = vector.broadcast %cst_9 : f32 to vector<8x1xf32>
    %17 = arith.maximumf %12, %16 : vector<8x1xf32>
    %18 = math.rsqrt %17 : vector<8x1xf32>
    %cst_10 = arith.constant 1.000000e-24 : f32
    %19 = vector.broadcast %cst_10 : f32 to vector<1x8xf32>
    %20 = arith.maximumf %15, %19 : vector<1x8xf32>
    %21 = math.rsqrt %20 : vector<1x8xf32>
    %22 = vector.broadcast %18 : vector<8x1xf32> to vector<8x8xf32>
    %23 = arith.mulf %9, %22 : vector<8x8xf32>
    %24 = vector.broadcast %21 : vector<1x8xf32> to vector<8x8xf32>
    %25 = arith.mulf %23, %24 : vector<8x8xf32>
    %26 = arith.mulf %25, %8 : vector<8x8xf32>
    %cst_11 = arith.constant 7.000000e-02 : f32
    %27 = vector.broadcast %cst_11 : f32 to vector<8x8xf32>
    %28 = arith.divf %26, %27 : vector<8x8xf32>
    %29 = math.exp %28 : vector<8x8xf32>
    %cst_12 = arith.constant 9.99999993E-9 : f32
    %30 = vector.broadcast %cst_12 : f32 to vector<8x8xf32>
    %31 = arith.addf %29, %30 : vector<8x8xf32>
    %32 = math.log %31 : vector<8x8xf32>
    %cst_13 = arith.constant 0.000000e+00 : f32
    %33 = vector.broadcast %cst_13 : f32 to vector<8x8xf32>
    %34 = arith.subf %33, %32 : vector<8x8xf32>
    %cst_14 = arith.constant 1.000000e+00 : f32
    %35 = vector.broadcast %cst_14 : f32 to vector<8x8xf32>
    %36 = arith.subf %35, %8 : vector<8x8xf32>
    %37 = arith.mulf %25, %36 : vector<8x8xf32>
    %cst_15 = arith.constant 5.000000e-01 : f32
    %38 = vector.broadcast %cst_15 : f32 to vector<8x8xf32>
    %39 = arith.subf %38, %37 : vector<8x8xf32>
    %cst_16 = arith.constant 0.000000e+00 : f32
    %40 = vector.broadcast %cst_16 : f32 to vector<8x8xf32>
    %41 = arith.maximumf %39, %40 : vector<8x8xf32>
    %42 = vector.shape_cast %34 : vector<8x8xf32> to vector<1x8x8xf32>
    %cst_17 = arith.constant dense<0.000000e+00> : vector<1xf32>
    %43 = vector.multi_reduction <add>, %42, %cst_17 [1, 2] : vector<1x8x8xf32> to vector<1xf32>
    %44 = vector.shape_cast %43 : vector<1xf32> to vector<1x1x1xf32>
    %45 = vector.extract %44[0, 0, 0] : f32 from vector<1x1x1xf32>
    %46 = vector.broadcast %45 : f32 to vector<1x1xf32>
    %47 = vector.shape_cast %41 : vector<8x8xf32> to vector<1x8x8xf32>
    %cst_18 = arith.constant dense<0.000000e+00> : vector<1xf32>
    %48 = vector.multi_reduction <add>, %47, %cst_18 [1, 2] : vector<1x8x8xf32> to vector<1xf32>
    %49 = vector.shape_cast %48 : vector<1xf32> to vector<1x1x1xf32>
    %50 = vector.extract %49[0, 0, 0] : f32 from vector<1x1x1xf32>
    %51 = vector.broadcast %50 : f32 to vector<1x1xf32>
    %52 = arith.addf %46, %51 : vector<1x1xf32>
    %cst_19 = arith.constant 6.400000e+01 : f32
    %53 = vector.broadcast %cst_19 : f32 to vector<1x1xf32>
    %54 = arith.divf %52, %53 : vector<1x1xf32>
    %55 = vector.broadcast %12 : vector<8x1xf32> to vector<8x8xf32>
    %56 = vector.broadcast %15 : vector<1x8xf32> to vector<8x8xf32>
    %57 = arith.addf %55, %56 : vector<8x8xf32>
    %cst_20 = arith.constant 2.000000e+00 : f32
    %58 = vector.broadcast %cst_20 : f32 to vector<8x8xf32>
    %59 = arith.mulf %58, %9 : vector<8x8xf32>
    %60 = arith.subf %57, %59 : vector<8x8xf32>
    %cst_21 = arith.constant 0.000000e+00 : f32
    %61 = vector.broadcast %cst_21 : f32 to vector<8x8xf32>
    %62 = arith.maximumf %60, %61 : vector<8x8xf32>
    %63 = math.sqrt %62 : vector<8x8xf32>
    %cst_22 = arith.constant 1.000000e+00 : f32
    %64 = vector.broadcast %cst_22 : f32 to vector<8x8xf32>
    %65 = arith.addf %63, %64 : vector<8x8xf32>
    %cst_23 = arith.constant 1.000000e+00 : f32
    %66 = vector.broadcast %cst_23 : f32 to vector<8x8xf32>
    %67 = arith.subf %66, %8 : vector<8x8xf32>
    %cst_24 = arith.constant 0.000000e+00 : f32
    %68 = vector.broadcast %cst_24 : f32 to vector<8x8xf32>
    %69 = vector.extract_strided_slice %65 {offsets = [0, 0], sizes = [8, 1], strides = [1, 1]} : vector<8x8xf32> to vector<8x1xf32>
    %70 = vector.extract_strided_slice %63 {offsets = [0, 0], sizes = [1, 8], strides = [1, 1]} : vector<8x8xf32> to vector<1x8xf32>
    %71 = vector.broadcast %69 : vector<8x1xf32> to vector<8x8xf32>
    %72 = vector.broadcast %70 : vector<1x8xf32> to vector<8x8xf32>
    %73 = arith.subf %71, %72 : vector<8x8xf32>
    %cst_25 = arith.constant 0.000000e+00 : f32
    %74 = vector.broadcast %cst_25 : f32 to vector<8x8xf32>
    %75 = arith.maximumf %73, %74 : vector<8x8xf32>
    %76 = vector.extract_strided_slice %8 {offsets = [0, 0], sizes = [8, 1], strides = [1, 1]} : vector<8x8xf32> to vector<8x1xf32>
    %77 = vector.extract_strided_slice %67 {offsets = [0, 0], sizes = [1, 8], strides = [1, 1]} : vector<8x8xf32> to vector<1x8xf32>
    %78 = vector.broadcast %76 : vector<8x1xf32> to vector<8x8xf32>
    %79 = vector.broadcast %77 : vector<1x8xf32> to vector<8x8xf32>
    %80 = arith.mulf %78, %79 : vector<8x8xf32>
    %81 = arith.mulf %75, %80 : vector<8x8xf32>
    %82 = arith.addf %68, %81 : vector<8x8xf32>
    %83 = vector.extract_strided_slice %65 {offsets = [0, 1], sizes = [8, 1], strides = [1, 1]} : vector<8x8xf32> to vector<8x1xf32>
    %84 = vector.extract_strided_slice %63 {offsets = [1, 0], sizes = [1, 8], strides = [1, 1]} : vector<8x8xf32> to vector<1x8xf32>
    %85 = vector.broadcast %83 : vector<8x1xf32> to vector<8x8xf32>
    %86 = vector.broadcast %84 : vector<1x8xf32> to vector<8x8xf32>
    %87 = arith.subf %85, %86 : vector<8x8xf32>
    %cst_26 = arith.constant 0.000000e+00 : f32
    %88 = vector.broadcast %cst_26 : f32 to vector<8x8xf32>
    %89 = arith.maximumf %87, %88 : vector<8x8xf32>
    %90 = vector.extract_strided_slice %8 {offsets = [0, 1], sizes = [8, 1], strides = [1, 1]} : vector<8x8xf32> to vector<8x1xf32>
    %91 = vector.extract_strided_slice %67 {offsets = [1, 0], sizes = [1, 8], strides = [1, 1]} : vector<8x8xf32> to vector<1x8xf32>
    %92 = vector.broadcast %90 : vector<8x1xf32> to vector<8x8xf32>
    %93 = vector.broadcast %91 : vector<1x8xf32> to vector<8x8xf32>
    %94 = arith.mulf %92, %93 : vector<8x8xf32>
    %95 = arith.mulf %89, %94 : vector<8x8xf32>
    %96 = arith.addf %82, %95 : vector<8x8xf32>
    %97 = vector.extract_strided_slice %65 {offsets = [0, 2], sizes = [8, 1], strides = [1, 1]} : vector<8x8xf32> to vector<8x1xf32>
    %98 = vector.extract_strided_slice %63 {offsets = [2, 0], sizes = [1, 8], strides = [1, 1]} : vector<8x8xf32> to vector<1x8xf32>
    %99 = vector.broadcast %97 : vector<8x1xf32> to vector<8x8xf32>
    %100 = vector.broadcast %98 : vector<1x8xf32> to vector<8x8xf32>
    %101 = arith.subf %99, %100 : vector<8x8xf32>
    %cst_27 = arith.constant 0.000000e+00 : f32
    %102 = vector.broadcast %cst_27 : f32 to vector<8x8xf32>
    %103 = arith.maximumf %101, %102 : vector<8x8xf32>
    %104 = vector.extract_strided_slice %8 {offsets = [0, 2], sizes = [8, 1], strides = [1, 1]} : vector<8x8xf32> to vector<8x1xf32>
    %105 = vector.extract_strided_slice %67 {offsets = [2, 0], sizes = [1, 8], strides = [1, 1]} : vector<8x8xf32> to vector<1x8xf32>
    %106 = vector.broadcast %104 : vector<8x1xf32> to vector<8x8xf32>
    %107 = vector.broadcast %105 : vector<1x8xf32> to vector<8x8xf32>
    %108 = arith.mulf %106, %107 : vector<8x8xf32>
    %109 = arith.mulf %103, %108 : vector<8x8xf32>
    %110 = arith.addf %96, %109 : vector<8x8xf32>
    %111 = vector.extract_strided_slice %65 {offsets = [0, 3], sizes = [8, 1], strides = [1, 1]} : vector<8x8xf32> to vector<8x1xf32>
    %112 = vector.extract_strided_slice %63 {offsets = [3, 0], sizes = [1, 8], strides = [1, 1]} : vector<8x8xf32> to vector<1x8xf32>
    %113 = vector.broadcast %111 : vector<8x1xf32> to vector<8x8xf32>
    %114 = vector.broadcast %112 : vector<1x8xf32> to vector<8x8xf32>
    %115 = arith.subf %113, %114 : vector<8x8xf32>
    %cst_28 = arith.constant 0.000000e+00 : f32
    %116 = vector.broadcast %cst_28 : f32 to vector<8x8xf32>
    %117 = arith.maximumf %115, %116 : vector<8x8xf32>
    %118 = vector.extract_strided_slice %8 {offsets = [0, 3], sizes = [8, 1], strides = [1, 1]} : vector<8x8xf32> to vector<8x1xf32>
    %119 = vector.extract_strided_slice %67 {offsets = [3, 0], sizes = [1, 8], strides = [1, 1]} : vector<8x8xf32> to vector<1x8xf32>
    %120 = vector.broadcast %118 : vector<8x1xf32> to vector<8x8xf32>
    %121 = vector.broadcast %119 : vector<1x8xf32> to vector<8x8xf32>
    %122 = arith.mulf %120, %121 : vector<8x8xf32>
    %123 = arith.mulf %117, %122 : vector<8x8xf32>
    %124 = arith.addf %110, %123 : vector<8x8xf32>
    %125 = vector.extract_strided_slice %65 {offsets = [0, 4], sizes = [8, 1], strides = [1, 1]} : vector<8x8xf32> to vector<8x1xf32>
    %126 = vector.extract_strided_slice %63 {offsets = [4, 0], sizes = [1, 8], strides = [1, 1]} : vector<8x8xf32> to vector<1x8xf32>
    %127 = vector.broadcast %125 : vector<8x1xf32> to vector<8x8xf32>
    %128 = vector.broadcast %126 : vector<1x8xf32> to vector<8x8xf32>
    %129 = arith.subf %127, %128 : vector<8x8xf32>
    %cst_29 = arith.constant 0.000000e+00 : f32
    %130 = vector.broadcast %cst_29 : f32 to vector<8x8xf32>
    %131 = arith.maximumf %129, %130 : vector<8x8xf32>
    %132 = vector.extract_strided_slice %8 {offsets = [0, 4], sizes = [8, 1], strides = [1, 1]} : vector<8x8xf32> to vector<8x1xf32>
    %133 = vector.extract_strided_slice %67 {offsets = [4, 0], sizes = [1, 8], strides = [1, 1]} : vector<8x8xf32> to vector<1x8xf32>
    %134 = vector.broadcast %132 : vector<8x1xf32> to vector<8x8xf32>
    %135 = vector.broadcast %133 : vector<1x8xf32> to vector<8x8xf32>
    %136 = arith.mulf %134, %135 : vector<8x8xf32>
    %137 = arith.mulf %131, %136 : vector<8x8xf32>
    %138 = arith.addf %124, %137 : vector<8x8xf32>
    %139 = vector.extract_strided_slice %65 {offsets = [0, 5], sizes = [8, 1], strides = [1, 1]} : vector<8x8xf32> to vector<8x1xf32>
    %140 = vector.extract_strided_slice %63 {offsets = [5, 0], sizes = [1, 8], strides = [1, 1]} : vector<8x8xf32> to vector<1x8xf32>
    %141 = vector.broadcast %139 : vector<8x1xf32> to vector<8x8xf32>
    %142 = vector.broadcast %140 : vector<1x8xf32> to vector<8x8xf32>
    %143 = arith.subf %141, %142 : vector<8x8xf32>
    %cst_30 = arith.constant 0.000000e+00 : f32
    %144 = vector.broadcast %cst_30 : f32 to vector<8x8xf32>
    %145 = arith.maximumf %143, %144 : vector<8x8xf32>
    %146 = vector.extract_strided_slice %8 {offsets = [0, 5], sizes = [8, 1], strides = [1, 1]} : vector<8x8xf32> to vector<8x1xf32>
    %147 = vector.extract_strided_slice %67 {offsets = [5, 0], sizes = [1, 8], strides = [1, 1]} : vector<8x8xf32> to vector<1x8xf32>
    %148 = vector.broadcast %146 : vector<8x1xf32> to vector<8x8xf32>
    %149 = vector.broadcast %147 : vector<1x8xf32> to vector<8x8xf32>
    %150 = arith.mulf %148, %149 : vector<8x8xf32>
    %151 = arith.mulf %145, %150 : vector<8x8xf32>
    %152 = arith.addf %138, %151 : vector<8x8xf32>
    %153 = vector.extract_strided_slice %65 {offsets = [0, 6], sizes = [8, 1], strides = [1, 1]} : vector<8x8xf32> to vector<8x1xf32>
    %154 = vector.extract_strided_slice %63 {offsets = [6, 0], sizes = [1, 8], strides = [1, 1]} : vector<8x8xf32> to vector<1x8xf32>
    %155 = vector.broadcast %153 : vector<8x1xf32> to vector<8x8xf32>
    %156 = vector.broadcast %154 : vector<1x8xf32> to vector<8x8xf32>
    %157 = arith.subf %155, %156 : vector<8x8xf32>
    %cst_31 = arith.constant 0.000000e+00 : f32
    %158 = vector.broadcast %cst_31 : f32 to vector<8x8xf32>
    %159 = arith.maximumf %157, %158 : vector<8x8xf32>
    %160 = vector.extract_strided_slice %8 {offsets = [0, 6], sizes = [8, 1], strides = [1, 1]} : vector<8x8xf32> to vector<8x1xf32>
    %161 = vector.extract_strided_slice %67 {offsets = [6, 0], sizes = [1, 8], strides = [1, 1]} : vector<8x8xf32> to vector<1x8xf32>
    %162 = vector.broadcast %160 : vector<8x1xf32> to vector<8x8xf32>
    %163 = vector.broadcast %161 : vector<1x8xf32> to vector<8x8xf32>
    %164 = arith.mulf %162, %163 : vector<8x8xf32>
    %165 = arith.mulf %159, %164 : vector<8x8xf32>
    %166 = arith.addf %152, %165 : vector<8x8xf32>
    %167 = vector.extract_strided_slice %65 {offsets = [0, 7], sizes = [8, 1], strides = [1, 1]} : vector<8x8xf32> to vector<8x1xf32>
    %168 = vector.extract_strided_slice %63 {offsets = [7, 0], sizes = [1, 8], strides = [1, 1]} : vector<8x8xf32> to vector<1x8xf32>
    %169 = vector.broadcast %167 : vector<8x1xf32> to vector<8x8xf32>
    %170 = vector.broadcast %168 : vector<1x8xf32> to vector<8x8xf32>
    %171 = arith.subf %169, %170 : vector<8x8xf32>
    %cst_32 = arith.constant 0.000000e+00 : f32
    %172 = vector.broadcast %cst_32 : f32 to vector<8x8xf32>
    %173 = arith.maximumf %171, %172 : vector<8x8xf32>
    %174 = vector.extract_strided_slice %8 {offsets = [0, 7], sizes = [8, 1], strides = [1, 1]} : vector<8x8xf32> to vector<8x1xf32>
    %175 = vector.extract_strided_slice %67 {offsets = [7, 0], sizes = [1, 8], strides = [1, 1]} : vector<8x8xf32> to vector<1x8xf32>
    %176 = vector.broadcast %174 : vector<8x1xf32> to vector<8x8xf32>
    %177 = vector.broadcast %175 : vector<1x8xf32> to vector<8x8xf32>
    %178 = arith.mulf %176, %177 : vector<8x8xf32>
    %179 = arith.mulf %173, %178 : vector<8x8xf32>
    %180 = arith.addf %166, %179 : vector<8x8xf32>
    %181 = vector.shape_cast %180 : vector<8x8xf32> to vector<1x8x8xf32>
    %cst_33 = arith.constant dense<0.000000e+00> : vector<1xf32>
    %182 = vector.multi_reduction <add>, %181, %cst_33 [1, 2] : vector<1x8x8xf32> to vector<1xf32>
    %183 = vector.shape_cast %182 : vector<1xf32> to vector<1x1x1xf32>
    %184 = vector.extract %183[0, 0, 0] : f32 from vector<1x1x1xf32>
    %185 = vector.broadcast %184 : f32 to vector<1x1xf32>
    %cst_34 = arith.constant 8.000000e+00 : f32
    %186 = vector.broadcast %cst_34 : f32 to vector<1x1xf32>
    %187 = arith.divf %185, %186 : vector<1x1xf32>
    %cst_35 = arith.constant dense<0xFF800000> : vector<8xf32>
    %188 = vector.multi_reduction <maximumf>, %0, %cst_35 [1] : vector<8x16xf32> to vector<8xf32>
    %189 = vector.shape_cast %188 : vector<8xf32> to vector<8x1xf32>
    %190 = vector.broadcast %189 : vector<8x1xf32> to vector<8x16xf32>
    %191 = arith.subf %0, %190 : vector<8x16xf32>
    %192 = math.exp %191 : vector<8x16xf32>
    %cst_36 = arith.constant dense<0.000000e+00> : vector<8xf32>
    %193 = vector.multi_reduction <add>, %192, %cst_36 [1] : vector<8x16xf32> to vector<8xf32>
    %194 = vector.shape_cast %193 : vector<8xf32> to vector<8x1xf32>
    %195 = math.log %194 : vector<8x1xf32>
    %196 = vector.broadcast %195 : vector<8x1xf32> to vector<8x16xf32>
    %197 = arith.subf %191, %196 : vector<8x16xf32>
    %198 = arith.mulf %7, %197 : vector<8x16xf32>
    %cst_37 = arith.constant dense<0.000000e+00> : vector<8xf32>
    %199 = vector.multi_reduction <add>, %198, %cst_37 [1] : vector<8x16xf32> to vector<8xf32>
    %200 = vector.shape_cast %199 : vector<8xf32> to vector<8x1xf32>
    %cst_38 = arith.constant 0.000000e+00 : f32
    %201 = vector.broadcast %cst_38 : f32 to vector<8x1xf32>
    %202 = arith.subf %201, %200 : vector<8x1xf32>
    %cst_39 = arith.constant 0.000000e+00 : f32
    %203 = vector.broadcast %cst_39 : f32 to vector<8x1xf32>
    %204 = arith.subf %203, %202 : vector<8x1xf32>
    %205 = math.exp %204 : vector<8x1xf32>
    %cst_40 = arith.constant 1.000000e+00 : f32
    %206 = vector.broadcast %cst_40 : f32 to vector<8x1xf32>
    %207 = arith.subf %206, %205 : vector<8x1xf32>
    %208 = arith.mulf %207, %207 : vector<8x1xf32>
    %cst_41 = arith.constant 2.500000e-01 : f32
    %209 = vector.broadcast %cst_41 : f32 to vector<8x1xf32>
    %210 = arith.mulf %209, %208 : vector<8x1xf32>
    %211 = arith.mulf %210, %202 : vector<8x1xf32>
    %212 = vector.shape_cast %211 : vector<8x1xf32> to vector<1x8x1xf32>
    %cst_42 = arith.constant dense<0.000000e+00> : vector<1xf32>
    %213 = vector.multi_reduction <add>, %212, %cst_42 [1, 2] : vector<1x8x1xf32> to vector<1xf32>
    %214 = vector.shape_cast %213 : vector<1xf32> to vector<1x1x1xf32>
    %215 = vector.extract %214[0, 0, 0] : f32 from vector<1x1x1xf32>
    %216 = vector.broadcast %215 : f32 to vector<1x1xf32>
    %cst_43 = arith.constant 8.000000e+00 : f32
    %217 = vector.broadcast %cst_43 : f32 to vector<1x1xf32>
    %218 = arith.divf %216, %217 : vector<1x1xf32>
    %cst_44 = arith.constant 1.000000e+00 : f32
    %219 = vector.broadcast %cst_44 : f32 to vector<8x16xf32>
    %220 = arith.subf %219, %7 : vector<8x16xf32>
    %cst_45 = arith.constant 0.00666666683 : f32
    %221 = vector.broadcast %cst_45 : f32 to vector<8x16xf32>
    %222 = arith.mulf %221, %220 : vector<8x16xf32>
    %cst_46 = arith.constant 0.899999976 : f32
    %223 = vector.broadcast %cst_46 : f32 to vector<8x16xf32>
    %224 = arith.mulf %223, %7 : vector<8x16xf32>
    %225 = arith.addf %222, %224 : vector<8x16xf32>
    %cst_47 = arith.constant 0.000000e+00 : f32
    %226 = vector.broadcast %cst_47 : f32 to vector<8x16xf32>
    %227 = arith.subf %226, %225 : vector<8x16xf32>
    %228 = arith.mulf %227, %197 : vector<8x16xf32>
    %cst_48 = arith.constant dense<0.000000e+00> : vector<8xf32>
    %229 = vector.multi_reduction <add>, %228, %cst_48 [1] : vector<8x16xf32> to vector<8xf32>
    %230 = vector.shape_cast %229 : vector<8xf32> to vector<8x1xf32>
    %231 = vector.shape_cast %230 : vector<8x1xf32> to vector<1x8x1xf32>
    %cst_49 = arith.constant dense<0.000000e+00> : vector<1xf32>
    %232 = vector.multi_reduction <add>, %231, %cst_49 [1, 2] : vector<1x8x1xf32> to vector<1xf32>
    %233 = vector.shape_cast %232 : vector<1xf32> to vector<1x1x1xf32>
    %234 = vector.extract %233[0, 0, 0] : f32 from vector<1x1x1xf32>
    %235 = vector.broadcast %234 : f32 to vector<1x1xf32>
    %cst_50 = arith.constant 8.000000e+00 : f32
    %236 = vector.broadcast %cst_50 : f32 to vector<1x1xf32>
    %237 = arith.divf %235, %236 : vector<1x1xf32>
    %cst_51 = arith.constant 1.000000e-01 : f32
    %238 = vector.broadcast %cst_51 : f32 to vector<1x1xf32>
    %239 = arith.mulf %238, %54 : vector<1x1xf32>
    %cst_52 = arith.constant 1.000000e-01 : f32
    %240 = vector.broadcast %cst_52 : f32 to vector<1x1xf32>
    %241 = arith.mulf %240, %187 : vector<1x1xf32>
    %242 = arith.addf %239, %241 : vector<1x1xf32>
    %cst_53 = arith.constant 4.000000e-01 : f32
    %243 = vector.broadcast %cst_53 : f32 to vector<1x1xf32>
    %244 = arith.mulf %243, %218 : vector<1x1xf32>
    %245 = arith.addf %242, %244 : vector<1x1xf32>
    %cst_54 = arith.constant 4.000000e-01 : f32
    %246 = vector.broadcast %cst_54 : f32 to vector<1x1xf32>
    %247 = arith.mulf %246, %237 : vector<1x1xf32>
    %248 = arith.addf %245, %247 : vector<1x1xf32>
    %249 = tpu.iota {dimensions = array<i32: 1>} : vector<1x128xi32>
    %cst_55 = arith.constant 0.000000e+00 : f32
    %250 = vector.broadcast %cst_55 : f32 to vector<1x128xf32>
    %c0_i32 = arith.constant 0 : i32
    %251 = vector.broadcast %c0_i32 : i32 to vector<1x128xi32>
    %252 = arith.cmpi eq, %249, %251 : vector<1x128xi32>
    %253 = vector.shape_cast %54 : vector<1x1xf32> to vector<1x1xf32>
    %254 = vector.broadcast %253 : vector<1x1xf32> to vector<1x128xf32>
    %255 = arith.select %252, %254, %250 : vector<1x128xi1>, vector<1x128xf32>
    %c1_i32 = arith.constant 1 : i32
    %256 = vector.broadcast %c1_i32 : i32 to vector<1x128xi32>
    %257 = arith.cmpi eq, %249, %256 : vector<1x128xi32>
    %258 = vector.shape_cast %187 : vector<1x1xf32> to vector<1x1xf32>
    %259 = vector.broadcast %258 : vector<1x1xf32> to vector<1x128xf32>
    %260 = arith.select %257, %259, %255 : vector<1x128xi1>, vector<1x128xf32>
    %c2_i32 = arith.constant 2 : i32
    %261 = vector.broadcast %c2_i32 : i32 to vector<1x128xi32>
    %262 = arith.cmpi eq, %249, %261 : vector<1x128xi32>
    %263 = vector.shape_cast %218 : vector<1x1xf32> to vector<1x1xf32>
    %264 = vector.broadcast %263 : vector<1x1xf32> to vector<1x128xf32>
    %265 = arith.select %262, %264, %260 : vector<1x128xi1>, vector<1x128xf32>
    %c3_i32 = arith.constant 3 : i32
    %266 = vector.broadcast %c3_i32 : i32 to vector<1x128xi32>
    %267 = arith.cmpi eq, %249, %266 : vector<1x128xi32>
    %268 = vector.shape_cast %237 : vector<1x1xf32> to vector<1x1xf32>
    %269 = vector.broadcast %268 : vector<1x1xf32> to vector<1x128xf32>
    %270 = arith.select %267, %269, %265 : vector<1x128xi1>, vector<1x128xf32>
    %c4_i32 = arith.constant 4 : i32
    %271 = vector.broadcast %c4_i32 : i32 to vector<1x128xi32>
    %272 = arith.cmpi eq, %249, %271 : vector<1x128xi32>
    %273 = vector.shape_cast %248 : vector<1x1xf32> to vector<1x1xf32>
    %274 = vector.broadcast %273 : vector<1x1xf32> to vector<1x128xf32>
    %275 = arith.select %272, %274, %270 : vector<1x128xi1>, vector<1x128xf32>
    %c0_56 = arith.constant 0 : index
    %c0_57 = arith.constant 0 : index
    %276 = vector.load %arg3[%c0_56, %c0_57] : memref<1x128xf32, #tpu.memory_space<vmem>>, vector<1x128xf32>
    tpu.vector_store %arg3[%c0_56, %c0_57], %275 {strides = array<i32>} : memref<1x128xf32, #tpu.memory_space<vmem>>, vector<1x128xf32>,
    return
  }
}

</mosaic_0001>

<bundles_post_ra>
// kernel: tpu_custom_call.1
= control target key start
LH: loop header
LB: loop body
LE: loop exit
PB: predicated region body
PF: predicated region fallthrough
CT: control target
= control target key end

     0   :  { %8 = vsyncpa [#allocation3], 0  ;;  %s1838_s0 = inlined_call_operand.vmem [shape: f32[8,16], index: 0, kind: input, shape index: {}]   ;;  %s1839_s1 = inlined_call_operand.hbm [shape: f32[8,32], index: 1, kind: input, shape index: {}]   ;;  %s1840_s2 = inlined_call_operand.vmem [shape: s32[8,1], index: 2, kind: input, shape index: {}]   ;;  %s1841_s3 = inlined_call_operand.hbm [shape: f32[1,128], index: 3, kind: output, shape index: {}]  }
   0x1   :  { %9 = vsyncpa [#allocation4], 0  ;;  %s1578_s12 = smov [#allocation2]   ;;  %s1530_s16 = scalar_lea.hbm %s1839_s1, 128 }
   0x2   :  { %s18_s13 = sshll.u32 %s1578_s12, 4  ;;  %p1531_p0 = scmp.ne.s32.totalorder %s1839_s1, %s1530_s16  ;;  %s19_s13 = int_to_ptr.vmem [resolvable:$true] %s18_s13 }
   0x3   :  { %p1534_p1 = scmp.lt.u32.totalorder %s1530_s16, %s1839_s1 }
   0x5   :  { %p1536_p2 = pnand %p1534_p1, %p1531_p0 }
   0x7   :  { %1539 = shalt.err (!%p1536_p2)
}
   0x8   :  { %s1540_s21 = scalar_lea.vmem %s19_s13, 128  ;;  %p1545_p4 = scmp.lt.s32.totalorder %s19_s13, %s19_s13 }
   0x9   :  { %p1541_p3 = scmp.ne.s32.totalorder %s19_s13, %s1540_s21  ;;  %p1546_p5 = scmp.lt.s32.totalorder %s1540_s21, %s1540_s21 }
   0xb   :  { %p1547_p6 = por %p1546_p5, %p1545_p4 }
   0xd   :  { %p1548_p7 = pnand %p1547_p6, %p1541_p3 }
   0xf   :  { %1551 = shalt.err (!%p1548_p7)
}
  0x10   :  { %21 = dma.hbm_to_vmem [thread:$0]  %s1839_s1, 128, %s19_s13, [#allocation3]  }
  0x11   :  { %1574 = dma.done.wait [#allocation3], 128  }
  0x12   :  { %1575 = vsyncadd [#allocation3], 4294967168  ;;  %v1579_v0 = vmov 0   ;;  %v1580_v1 = vmov 0.0   ;;  %vm1581_vm0 = vmmov 0   ;;  %vm112_vm1 = vcmask 261120  }
  0x13   :  { %1497 = vset.pattern.permute.xlu0 %v1579_v0  ;;  %1394 = vmatprep.subr.mxu1 %v1580_v1  ;;  %v29_v2 = vld [vmem:[%s1840_s2] sm:$0xff]  ;;  %vm38_vm2 = vcmask 130048   ;;  %v567_v14 = vsel %vm112_vm1, 1.0, %v1579_v0  ;;  %v30_v16 = vlaneseq  ;;  %v1582_v28 = vmov 1.0   ;;  %s1590_s30 = smov [#allocation5]  }
  0x14   :  { %1396 = vmatprep.mubr.msk.f32.mxu1 %vm1581_vm0, %v1580_v1  ;;  %1389 = vmatprep.subr.mxu0 %v1580_v1  ;;  %v28_v3 = vld [vmem:[#allocation2] sm:$0xff]  ;;  %v639_v17 = vsub.f32 %v567_v14, %v567_v14  ;;  %v1583_v35 = vmov 1   ;;  %v1584_v59 = vmov 7   ;;  %v1585_v63 = vmov 2   ;;  %s1348_s4 = sshll.u32 %s1590_s30, 4  ;;  %s1349_s4 = int_to_ptr.vmem [resolvable:$true] %s1348_s4 }
  0x15   :  { %1391 = vmatprep.mubr.msk.f32.mxu0 %vm1581_vm0, %v1580_v1  ;;  %1498 = vset.pattern.permute.xlu1 %v1579_v0  ;;  %v114_v4 = vsel %vm112_vm1, %v28_v3, 0  ;;  %v27_v10 = vld [vmem:[%s1838_s0] sm:$0xff]  ;;  %v562_v12 = vmul.f32 %v28_v3, %v28_v3  ;;  %v1657_v19 = vand.u32 127, %v30_v16  ;;  %v1693_v39 = vshrl.u32 %v30_v16, 7  ;;  %s1552_s5 = scalar_lea.vmem %s1349_s4, 16  ;;  %s1556_s6 = scalar_lea.vmem %s1349_s4, 32 }
  0x16   :  { %33 = vperm.xlu0 %1497, %v29_v2   ;;  %v117_v5 = vand.u32 4294901760, %v114_v4  ;;  %v1266_v11 = vsel %vm38_vm2, %v27_v10, -inf  ;;  %v640_v20 = vand.u32 4294901760, %v639_v17  ;;  %v1587_v2 = vmov 4   ;;  %p1553_p8 = scmp.ne.s32.totalorder %s1349_s4, %s1552_s5  ;;  %p1557_p9 = scmp.lt.s32.totalorder %s1349_s4, %s1349_s4 }
  0x17   :  { %v570_v13 = vsel %vm112_vm1, %v562_v12, 0  ;;  %v563_v34 = vsel %vm112_vm1, %v562_v12, 0.0  ;;  %v1112_v42 = vsub.s32 1, %v1693_v39  ;;  %v1238_v43 = vsub.s32 7, %v1693_v39  ;;  %p1558_p10 = scmp.lt.s32.totalorder %s1556_s6, %s1552_s5 }
  0x18   :  { %1395 = vmatpush3.xpose.msra.mxu1 %v117_v5  ;;  %v183_v6 = vsub.f32 %v114_v4, %v117_v5  ;;  %v573_v15 = vand.u32 4294901760, %v570_v13  ;;  %v641_v24 = vsub.f32 %v639_v17, %v640_v20  ;;  %v1133_v44 = vsub.s32 2, %v1693_v39 }
  0x19   :  { %1399 = vmatprep.subr.mxu1 %v1580_v1  ;;  %v1154_v47 = vsub.s32 3, %v1693_v39  ;;  %v1175_v50 = vsub.s32 4, %v1693_v39  ;;  %v1196_v51 = vsub.s32 5, %v1693_v39  ;;  %v1217_v52 = vsub.s32 6, %v1693_v39  ;;  %p1559_p11 = por %p1558_p10, %p1557_p9 }
  0x1a   :  { %v184_v7 = vand.u32 4294901760, %v183_v6  ;;  %v650_v18 = vsub.f32 %v570_v13, %v573_v15  ;;  %v642_v26 = vand.u32 4294901760, %v641_v24  ;;  %1499 = vset.pattern.permute.xlu0 %v1583_v35  ;;  %vm1041_vm6 = vcmask 64512  }
  0x1b   :  { %vm1290_vm7 = vcmask 7168   ;;  %vm1331_vm8 = vcmp.eq.s32.totalorder %v1657_v19, 0  ;;  %vm1333_vm9 = vcmp.eq.s32.totalorder %v1657_v19, 1  ;;  %vm1335_vm10 = vcmp.eq.s32.totalorder %v1657_v19, 2  ;;  %p1560_p12 = pnand %p1559_p11, %p1553_p8 }
  0x1c   :  { %v185_v8 = vsub.f32 %v183_v6, %v184_v7  ;;  %v651_v21 = vand.u32 4294901760, %v650_v18  ;;  %vm1337_vm11 = vcmp.eq.s32.totalorder %v1657_v19, 3  ;;  %vm1339_vm12 = vcmp.eq.s32.totalorder %v1657_v19, 4 }
  0x1e   :  { %v186_v9 = vand.u32 4294901760, %v185_v8  ;;  %v652_v25 = vsub.f32 %v650_v18, %v651_v21 }
  0x20   :  { %1397 = vmatmul.mubr.f32.vlgmr.msra.gmra.mrb[0].mxu1 %v186_v9  ;;  %v653_v27 = vand.u32 4294901760, %v652_v25 }
  0x21   :  { %1400 = vmatpush3.xpose.msra.mxu1 %v186_v9  ;;  %1401 = vmatprep.mubr.msk.f32.mxu1 %vm1581_vm0, %v1580_v1 }
  0x22   :  { %1404 = vmatprep.subr.mxu1 %v1580_v1 }
  0x28   :  { %1402 = vmatmul.mubr.f32.vlgmr.msra.gmra.mrb[0].mxu1 %v117_v5 }
  0x29   :  { %1405 = vmatpush3.xpose.msra.mxu1 %v183_v6  ;;  %1406 = vmatprep.mubr.msk.f32.mxu1 %vm1581_vm0, %v1580_v1 }
  0x2a   :  { %1409 = vmatprep.subr.mxu1 %v1580_v1 }
  0x30   :  { %1407 = vmatmul.mubr.f32.vlgmr.msra.gmra.mrb[0].mxu1 %v183_v6  ;;  %v1746_v6 = vsub.s32 0, %v1693_v39 }
  0x31   :  { %1410 = vmatpush3.xpose.msra.mxu1 %v117_v5  ;;  %1411 = vmatprep.mubr.msk.f32.mxu1 %vm1581_vm0, %v1580_v1 }
  0x32   :  { %1414 = vmatprep.subr.mxu1 %v1580_v1 }
  0x35   :  { %1267 = vmax.xlane.f32.xlu0 %v1266_v11  ;;  %v1589_v11 = vmov 6  }
  0x38   :  { %1412 = vmatmul.mubr.f32.vlgmr.msra.gmra.mrb[0].mxu1 %v184_v7 }
  0x39   :  { %1415 = vmatpush3.xpose.msra.mxu1 %v184_v7  ;;  %1416 = vmatprep.mubr.msk.f32.mxu1 %vm1581_vm0, %v1580_v1 }
  0x3a   :  { %1419 = vmatprep.subr.mxu1 %v1580_v1 }
  0x40   :  { %1417 = vmatmul.mubr.f32.vlgmr.msra.gmra.mrb[0].mxu1 %v117_v5 }
  0x41   :  { %1420 = vmatpush3.xpose.msra.mxu1 %v117_v5  ;;  %1421 = vmatprep.mubr.msk.f32.mxu1 %vm1581_vm0, %v1580_v1 }
  0x48   :  { %1422 = vmatmul.mubr.f32.vlgmr.msra.gmra.mrb[0].mxu1 %v117_v5  ;;  %v1588_v5 = vmov 5  }
  0x95   :  { %v34_v22 = vpop.permute.xlu0 %33 }
  0x96   :  { %vm35_vm3 = vcmp.eq.s32.totalorder %v1657_v19, %v34_v22 }
  0x97   :  { %v1661_v23 = vsel %vm35_vm3, 1.0, %v1580_v1 }
  0x98   :  { %1390 = vmatpush3.xpose.msk.msra.mxu0 %vm38_vm2, %v1661_v23 }
  0x99   :  { %1424 = vmatprep.subr.mxu0 %v1580_v1 }
  0x9b   :  { %1392 = vmatmul.mubr.msk.f32.vlgmr.msra.gmra.mrb[0].mxu0 %vm38_vm2, %v1661_v23 }
  0x9c   :  { %1425 = vmatpush3.xpose.msra.mxu0 %v573_v15  ;;  %1426 = vmatprep.mubr.msk.f32.mxu0 %vm1581_vm0, %v1580_v1 }
  0x9d   :  { %1429 = vmatprep.subr.mxu0 %v1580_v1 }
  0x9f   :  { %1427 = vmatmul.mubr.f32.vlgmr.msra.gmra.mrb[2].mxu0 %v642_v26 }
  0xa0   :  { %1430 = vmatpush3.xpose.msra.mxu0 %v653_v27  ;;  %1431 = vmatprep.mubr.msk.f32.mxu0 %vm1581_vm0, %v1580_v1 }
  0xa1   :  { %1434 = vmatprep.subr.mxu0 %v1580_v1 }
  0xa7   :  { %1432 = vmatmul.mubr.msk.f32.vlgmr.msra.gmra.mrb[2].mxu0 %vm112_vm1, %v1582_v28 }
  0xa8   :  { %1435 = vmatpush3.xpose.msra.mxu0 %v650_v18  ;;  %1436 = vmatprep.mubr.msk.f32.mxu0 %vm1581_vm0, %v1580_v1 }
  0xa9   :  { %1439 = vmatprep.subr.mxu0 %v1580_v1 }
  0xaf   :  { %1437 = vmatmul.mubr.f32.vlgmr.msra.gmra.mrb[2].mxu0 %v639_v17 }
  0xb0   :  { %1440 = vmatpush3.xpose.msra.mxu0 %v573_v15  ;;  %1441 = vmatprep.mubr.msk.f32.mxu0 %vm1581_vm0, %v1580_v1 }
  0xb1   :  { %1444 = vmatprep.subr.mxu0 %v1580_v1 }
  0xb7   :  { %1442 = vmatmul.mubr.f32.vlgmr.msra.gmra.mrb[2].mxu0 %v640_v20 }
  0xb8   :  { %1445 = vmatpush3.xpose.msra.mxu0 %v651_v21  ;;  %1446 = vmatprep.mubr.msk.f32.mxu0 %vm1581_vm0, %v1580_v1 }
  0xb9   :  { %1449 = vmatprep.subr.mxu0 %v1580_v1 }
  0xbf   :  { %1447 = vmatmul.mubr.msk.f32.vlgmr.msra.gmra.mrb[2].mxu0 %vm112_vm1, %v1582_v28 }
  0xc0   :  { %1450 = vmatpush3.xpose.msra.mxu0 %v573_v15  ;;  %1451 = vmatprep.mubr.msk.f32.mxu0 %vm1581_vm0, %v1580_v1  ;;  %v1586_v1 = vmov 3  }
  0xc2   :  { %v1268_v29 = vpop.xlane.xlu0 %1267 }
  0xc3   :  { %v1269_v30 = vsub.f32 %v27_v10, %v1268_v29 }
  0xc5   :  { %v1270_v31 = vmul.f32 1.442695, %v1269_v30 }
  0xc7   :  { %1514 = vpow2.f32 %v1270_v31  ;;  %1452 = vmatmul.mubr.msk.f32.vlgmr.msra.gmra.mrb[2].mxu0 %vm112_vm1, %v1582_v28 }
  0xd1   :  { %v1515_v32 = vpop.eup %1514 }
  0xd2   :  { %v1272_v33 = vsel %vm38_vm2, %v1515_v32, 0.0 }
  0xd3   :  { %1273 = vadd.xlane.f32.xlu1 %v1272_v33 }
  0xd7   :  { %564 = vadd.xlane.f32.xlu1 %v563_v34 }
 0x11b   :  { %v1691_v36 = vpop.f32.mrb[0].mxu1 }
 0x11c   :  { %v1423_v37 = vpop.f32.mrb[1].mxu1  ;;  %v1072_v12 = vmul.f32 2.0, %v1691_v36 }
 0x160   :  { %v1274_v38 = vpop.xlane.xlu1 %1273 }
 0x161   :  { %1516 = vlog2.f32 %v1274_v38 }
 0x164   :  { %v565_v3 = vpop.xlane.xlu1 %564 }
 0x165   :  { %v1018_v4 = vmax.f32 %v565_v3, 1e-24 }
 0x167   :  { %1518 = vrsqrt.f32 %v1018_v4 }
 0x16b   :  { %v1517_v40 = vpop.eup %1516 }
 0x16c   :  { %v1276_v41 = vmul.f32 0.6931472, %v1517_v40 }
 0x16e   :  { %v108_v45 = vpop.f32.mrb[0].mxu0  ;;  %v1698_v46 = vsub.f32 %v1269_v30, %v1276_v41 }
 0x16f   :  { %v1701_v48 = vsub.f32 1.0, %v108_v45  ;;  %v1393_v49 = vpop.f32.mrb[1].mxu0  ;;  %1117 = vperm.xlu0 %1499, %v108_v45  }
 0x170   :  { %v1278_v53 = vmul.f32 %v1661_v23, %v1698_v46  ;;  %v1305_v49 = vmul.f32 0.9, %v1661_v23 }
 0x171   :  { %v1711_v54 = vrot.slane %v1701_v48, %v1112_v42  ;;  %v1716_v55 = vrot.slane %v1701_v48, %v1238_v43  ;;  %v1721_v56 = vrot.slane %v1701_v48, %v1133_v44  ;;  %v1727_v58 = vrot.slane %v1701_v48, %v1154_v47  ;;  %v1519_v16 = vpop.eup %1518 }
 0x172   :  { %v1279_v57 = vsel %vm38_vm2, %v1278_v53, 0.0  ;;  %v1733_v60 = vrot.slane %v1701_v48, %v1175_v50  ;;  %v1738_v61 = vrot.slane %v1701_v48, %v1196_v51  ;;  %v1743_v62 = vrot.slane %v1701_v48, %v1217_v52 }
 0x173   :  { %1505 = vset.pattern.permute.xlu0 %v1584_v59  ;;  %1280 = vadd.xlane.f32.xlu1 %v1279_v57  ;;  %v1022_v18 = vmul.f32 %v1519_v16, %v1691_v36 }
 0x174   :  { %1243 = vperm.xlu0 %1505, %v108_v45  }
 0x184   :  { %1096 = vperm.xlu1 %1498, %v108_v45  }
 0x188   :  { %1500 = vset.pattern.permute.xlu1 %v1585_v63 }
 0x189   :  { %1138 = vperm.xlu1 %1500, %v108_v45  }
 0x18d   :  { %1501 = vset.pattern.permute.xlu1 %v1586_v1 }
 0x18e   :  { %1159 = vperm.xlu1 %1501, %v108_v45  }
 0x192   :  { %1502 = vset.pattern.permute.xlu1 %v1587_v2 }
 0x193   :  { %1180 = vperm.xlu1 %1502, %v108_v45  }
 0x197   :  { %1503 = vset.pattern.permute.xlu1 %v1588_v5 }
 0x198   :  { %1201 = vperm.xlu1 %1503, %v108_v45  }
 0x19a   :  { %v1014_v7 = vpop.f32.mrb[2].mxu0 }
 0x19b   :  { %v1020_v8 = vmax.f32 %v1014_v7, 1e-24  ;;  %v1070_v9 = vrot.slane %v1014_v7, %v1746_v6  ;;  %v1453_v10 = vpop.f32.mrb[3].mxu0 }
 0x19c   :  { %1504 = vset.pattern.permute.xlu1 %v1589_v11 }
 0x19d   :  { %1520 = vrsqrt.f32 %v1020_v8  ;;  %v1071_v13 = vadd.f32 %v1070_v9, %v565_v3  ;;  %1222 = vperm.xlu1 %1504, %v108_v45  }
 0x19f   :  { %v1073_v14 = vsub.f32 %v1071_v13, %v1072_v12 }
 0x1a1   :  { %v1074_v15 = vmax.f32 %v1073_v14, 0.0  ;;  %1506 = vset.pattern.permute.xlu1 %v1579_v0 }
 0x1a3   :  { %1522 = vrsqrt.f32 %v1074_v15  ;;  %vm1077_vm4 = vcmp.eq.f32.partialorder %v1074_v15, inf  ;;  %v1080_v28 = vand.u32 2147483648, %v1074_v15  ;;  %vm1079_vm5 = vcmp.eq.f32.partialorder %v1074_v15, 0.0 }
 0x1a7   :  { %v1521_v17 = vpop.eup %1520 }
 0x1a8   :  { %v1026_v20 = vrot.slane %v1521_v17, %v1746_v6 }
 0x1aa   :  { %v1027_v21 = vmul.f32 %v1026_v20, %v1022_v18  ;;  %v1102_v18 = vrot.slane %v1701_v48, %v1746_v6 }
 0x1ac   :  { %v1028_v22 = vmul.f32 %v1027_v21, %v108_v45  ;;  %v1038_v24 = vmul.f32 %v1701_v48, %v1027_v21 }
 0x1ad   :  { %v1523_v25 = vpop.eup %1522 }
 0x1ae   :  { %v1076_v26 = vmul.f32 %v1523_v25, %v1074_v15  ;;  %v1030_v27 = vmul.f32 14.285714, %v1028_v22  ;;  %v1039_v53 = vsub.f32 0.5, %v1038_v24 }
 0x1b0   :  { %v1078_v29 = vsel %vm1077_vm4, %v1074_v15, %v1076_v26  ;;  %v1031_v30 = vmul.f32 1.442695, %v1030_v27 }
 0x1b1   :  { %v1754_v0 = vsel %vm1079_vm5, %v1080_v28, %v1078_v29 }
 0x1b2   :  { %v1082_v31 = vadd.f32 1.0, %v1754_v0  ;;  %1524 = vpow2.f32 %v1031_v30  ;;  %v1760_v32 = vrot.slane %v1754_v0, %v1112_v42  ;;  %v1765_v33 = vrot.slane %v1754_v0, %v1133_v44 }
 0x1b3   :  { %v1770_v34 = vrot.slane %v1754_v0, %v1154_v47  ;;  %v1775_v36 = vrot.slane %v1754_v0, %v1175_v50  ;;  %v1780_v37 = vrot.slane %v1754_v0, %v1196_v51  ;;  %v1785_v38 = vrot.slane %v1754_v0, %v1217_v52 }
 0x1b4   :  { %1085 = vperm.xlu1 %1506, %v1082_v31   ;;  %v1790_v40 = vrot.slane %v1754_v0, %v1238_v43  ;;  %v1091_v16 = vrot.slane %v1754_v0, %v1746_v6 }
 0x1b8   :  { %1507 = vset.pattern.permute.xlu1 %v1583_v35  ;;  %v1303_v35 = vsub.f32 1.0, %v1661_v23 }
 0x1b9   :  { %1107 = vperm.xlu1 %1507, %v1082_v31  }
 0x1ba   :  { %v1304_v43 = vmul.f32 0.006666667, %v1303_v35 }
 0x1bc   :  { %v1525_v41 = vpop.eup %1524  ;;  %v1306_v50 = vadd.f32 %v1305_v49, %v1304_v43 }
 0x1bd   :  { %1508 = vset.pattern.permute.xlu1 %v1585_v63  ;;  %v1033_v42 = vadd.f32 1e-08, %v1525_v41  ;;  %v1040_v63 = vmax.f32 %v1039_v53, 0.0 }
 0x1be   :  { %1128 = vperm.xlu1 %1508, %v1082_v31   ;;  %v1307_v51 = vsub.f32 0.0, %v1306_v50 }
 0x1bf   :  { %1526 = vlog2.f32 %v1033_v42 }
 0x1c0   :  { %v1308_v52 = vmul.f32 %v1307_v51, %v1698_v46 }
 0x1c2   :  { %1509 = vset.pattern.permute.xlu1 %v1586_v1  ;;  %v1309_v57 = vsel %vm38_vm2, %v1308_v52, 0.0  ;;  %v1053_v1 = vsel %vm1041_vm6, %v1040_v63, 0.0 }
 0x1c3   :  { %1149 = vperm.xlu1 %1509, %v1082_v31  }
 0x1c7   :  { %1510 = vset.pattern.permute.xlu1 %v1587_v2 }
 0x1c8   :  { %1170 = vperm.xlu1 %1510, %v1082_v31  }
 0x1c9   :  { %v1527_v44 = vpop.eup %1526 }
 0x1ca   :  { %v1035_v45 = vmul.f32 0.6931472, %v1527_v44 }
 0x1cc   :  { %1511 = vset.pattern.permute.xlu1 %v1588_v5  ;;  %v1036_v47 = vsub.f32 0.0, %v1035_v45 }
 0x1cd   :  { %1191 = vperm.xlu1 %1511, %v1082_v31  }
 0x1ce   :  { %v1042_v39 = vsel %vm1041_vm6, %v1036_v47, 0.0 }
 0x1cf   :  { %1043 = vadd.xlane.f32.xlu0 %v1042_v39 }
 0x1d1   :  { %1512 = vset.pattern.permute.xlu1 %v1589_v11 }
 0x1d2   :  { %1212 = vperm.xlu1 %1512, %v1082_v31  }
 0x1d6   :  { %1513 = vset.pattern.permute.xlu1 %v1584_v59 }
 0x1d7   :  { %1233 = vperm.xlu1 %1513, %v1082_v31  }
 0x1ee   :  { %v1118_v24 = vpop.permute.xlu0 %1117 }
 0x1ef   :  { %v1124_v28 = vmul.f32 %v1711_v54, %v1118_v24 }
 0x1fb   :  { %1310 = vadd.xlane.f32.xlu1 %v1309_v57 }
 0x1ff   :  { %1054 = vadd.xlane.f32.xlu1 %v1053_v1 }
 0x200   :  { %v1281_v2 = vpop.xlane.xlu1 %1280 }
 0x201   :  { %v1282_v59 = vsub.f32 0.0, %v1281_v2 }
 0x203   :  { %v1283_v3 = vsub.f32 0.0, %v1282_v59 }
 0x204   :  { %v1097_v7 = vpop.permute.xlu1 %1096 }
 0x205   :  { %v1284_v4 = vmul.f32 1.442695, %v1283_v3  ;;  %v1103_v21 = vmul.f32 %v1102_v18, %v1097_v7  ;;  %v1244_v3 = vpop.permute.xlu0 %1243 }
 0x207   :  { %1528 = vpow2.f32 %v1284_v4 }
 0x208   :  { %v1139_v10 = vpop.permute.xlu1 %1138 }
 0x209   :  { %v1145_v42 = vmul.f32 %v1721_v56, %v1139_v10 }
 0x20d   :  { %v1160_v12 = vpop.permute.xlu1 %1159 }
 0x20e   :  { %v1166_v39 = vmul.f32 %v1727_v58, %v1160_v12 }
 0x211   :  { %v1529_v5 = vpop.eup %1528 }
 0x212   :  { %v1286_v23 = vsub.f32 1.0, %v1529_v5  ;;  %v1181_v13 = vpop.permute.xlu1 %1180 }
 0x213   :  { %v1187_v50 = vmul.f32 %v1733_v60, %v1181_v13 }
 0x214   :  { %v1287_v8 = vmul.f32 %v1286_v23, %v1286_v23 }
 0x216   :  { %v1288_v9 = vmul.f32 0.25, %v1287_v8 }
 0x217   :  { %v1202_v14 = vpop.permute.xlu1 %1201 }
 0x218   :  { %v1289_v46 = vmul.f32 %v1288_v9, %v1282_v59  ;;  %v1208_v57 = vmul.f32 %v1738_v61, %v1202_v14 }
 0x21a   :  { %v1291_v11 = vsel %vm1290_vm7, %v1289_v46, 0.0 }
 0x21b   :  { %1292 = vadd.xlane.f32.xlu1 %v1291_v11 }
 0x21c   :  { %v1223_v15 = vpop.permute.xlu1 %1222 }
 0x21d   :  { %v1229_v59 = vmul.f32 %v1743_v62, %v1223_v15 }
 0x233   :  { %v1086_v17 = vpop.permute.xlu1 %1085 }
 0x234   :  { %v1092_v20 = vsub.f32 %v1086_v17, %v1091_v16 }
 0x236   :  { %v1093_v22 = vmax.f32 %v1092_v20, 0.0 }
 0x238   :  { %v1104_v25 = vmul.f32 %v1103_v21, %v1093_v22  ;;  %v1108_v26 = vpop.permute.xlu1 %1107 }
 0x239   :  { %v1114_v27 = vsub.f32 %v1108_v26, %v1760_v32 }
 0x23b   :  { %v1115_v29 = vmax.f32 %v1114_v27, 0.0 }
 0x23d   :  { %v1125_v30 = vmul.f32 %v1124_v28, %v1115_v29  ;;  %v1129_v31 = vpop.permute.xlu1 %1128 }
 0x23e   :  { %v1135_v41 = vsub.f32 %v1129_v31, %v1765_v33 }
 0x23f   :  { %v1126_v0 = vadd.f32 %v1125_v30, %v1104_v25 }
 0x240   :  { %v1136_v44 = vmax.f32 %v1135_v41, 0.0 }
 0x242   :  { %v1146_v48 = vmul.f32 %v1145_v42, %v1136_v44  ;;  %v1150_v6 = vpop.permute.xlu1 %1149 }
 0x243   :  { %v1156_v45 = vsub.f32 %v1150_v6, %v1770_v34 }
 0x244   :  { %v1147_v47 = vadd.f32 %v1146_v48, %v1126_v0 }
 0x245   :  { %v1157_v35 = vmax.f32 %v1156_v45, 0.0 }
 0x247   :  { %v1167_v32 = vmul.f32 %v1166_v39, %v1157_v35  ;;  %v1171_v43 = vpop.permute.xlu1 %1170 }
 0x248   :  { %v1177_v54 = vsub.f32 %v1171_v43, %v1775_v36 }
 0x249   :  { %v1168_v49 = vadd.f32 %v1167_v32, %v1147_v47 }
 0x24a   :  { %v1178_v33 = vmax.f32 %v1177_v54, 0.0 }
 0x24c   :  { %v1188_v51 = vmul.f32 %v1187_v50, %v1178_v33  ;;  %v1192_v52 = vpop.permute.xlu1 %1191 }
 0x24d   :  { %v1198_v56 = vsub.f32 %v1192_v52, %v1780_v37  ;;  %v1250_v37 = vmul.f32 %v1716_v55, %v1244_v3 }
 0x24e   :  { %v1189_v53 = vadd.f32 %v1188_v51, %v1168_v49 }
 0x24f   :  { %v1199_v34 = vmax.f32 %v1198_v56, 0.0 }
 0x251   :  { %v1209_v63 = vmul.f32 %v1208_v57, %v1199_v34  ;;  %v1213_v1 = vpop.permute.xlu1 %1212 }
 0x252   :  { %v1219_v58 = vsub.f32 %v1213_v1, %v1785_v38 }
 0x253   :  { %v1210_v2 = vadd.f32 %v1209_v63, %v1189_v53 }
 0x254   :  { %v1220_v36 = vmax.f32 %v1219_v58, 0.0 }
 0x256   :  { %v1230_v4 = vmul.f32 %v1229_v59, %v1220_v36  ;;  %v1234_v60 = vpop.permute.xlu1 %1233 }
 0x257   :  { %v1240_v5 = vsub.f32 %v1234_v60, %v1790_v40 }
 0x258   :  { %v1231_v7 = vadd.f32 %v1230_v4, %v1210_v2 }
 0x259   :  { %v1241_v23 = vmax.f32 %v1240_v5, 0.0 }
 0x25b   :  { %v1251_v8 = vmul.f32 %v1250_v37, %v1241_v23 }
 0x25c   :  { %v1044_v61 = vpop.xlane.xlu0 %1043 }
 0x25d   :  { %v1045_v9 = vrot.slane %v1044_v61, 4  ;;  %v1252_v10 = vadd.f32 %v1251_v8, %v1231_v7 }
 0x25f   :  { %v1046_v46 = vadd.f32 %v1045_v9, %v1044_v61  ;;  %v1253_v38 = vsel %vm1041_vm6, %v1252_v10, 0.0 }
 0x260   :  { %1254 = vadd.xlane.f32.xlu0 %v1253_v38 }
 0x261   :  { %v1047_v11 = vrot.slane %v1046_v46, 2 }
 0x263   :  { %v1048_v62 = vadd.f32 %v1047_v11, %v1046_v46 }
 0x265   :  { %v1049_v12 = vrot.slane %v1048_v62, 1 }
 0x267   :  { %v1050_v13 = vadd.f32 %v1049_v12, %v1048_v62 }
 0x269   :  { %1474 = vpush %v1050_v13 }
 0x288   :  { %v1311_v14 = vpop.xlane.xlu1 %1310 }
 0x289   :  { %v1312_v40 = vsel %vm1290_vm7, %v1311_v14, 0.0 }
 0x28a   :  { %1313 = vadd.xlane.f32.xlu0 %v1312_v40 }
 0x28c   :  { %v1055_v15 = vpop.xlane.xlu1 %1054 }
 0x28d   :  { %v1056_v55 = vrot.slane %v1055_v15, 4 }
 0x28f   :  { %v1057_v16 = vadd.f32 %v1056_v55, %v1055_v15 }
 0x291   :  { %v1058_v17 = vrot.slane %v1057_v16, 2 }
 0x293   :  { %v1059_v18 = vadd.f32 %v1058_v17, %v1057_v16 }
 0x295   :  { %v1060_v20 = vrot.slane %v1059_v18, 1 }
 0x297   :  { %v1061_v21 = vadd.f32 %v1060_v20, %v1059_v18 }
 0x299   :  { %1476 = vpush %v1061_v21 }
 0x29a   :  { %s1475_s0 = spop %1474 }
 0x29b   :  { %v1052_v49 = vstv %s1475_s0 }
 0x2a8   :  { %v1293_v22 = vpop.xlane.xlu1 %1292 }
 0x2a9   :  { %v1294_v24 = vrot.slane %v1293_v22, 4 }
 0x2ab   :  { %v1295_v25 = vadd.f32 %v1294_v24, %v1293_v22 }
 0x2ad   :  { %v1296_v26 = vrot.slane %v1295_v25, 2 }
 0x2af   :  { %v1297_v30 = vadd.f32 %v1296_v26, %v1295_v25 }
 0x2b1   :  { %v1298_v0 = vrot.slane %v1297_v30, 1 }
 0x2b3   :  { %v1299_v48 = vadd.f32 %v1298_v0, %v1297_v30 }
 0x2ca   :  { %s1477_s26 = spop %1476 }
 0x2cb   :  { %v1063_v54 = vstv %s1477_s26 }
 0x2cc   :  { %v1064_v33 = vadd.f32 %v1063_v54, %v1052_v49 }
 0x2ce   :  { %v1066_v52 = vmul.f32 0.015625, %v1064_v33 }
 0x2d0   :  { %v1324_v57 = vmul.f32 0.1, %v1066_v52  ;;  %v1332_v58 = vsel %vm1331_vm8, %v1066_v52, 0.0 }
 0x2ed   :  { %v1255_v27 = vpop.xlane.xlu0 %1254 }
 0x2ee   :  { %v1256_v28 = vrot.slane %v1255_v27, 4 }
 0x2f0   :  { %v1257_v29 = vadd.f32 %v1256_v28, %v1255_v27 }
 0x2f2   :  { %v1258_v31 = vrot.slane %v1257_v29, 2 }
 0x2f4   :  { %v1259_v41 = vadd.f32 %v1258_v31, %v1257_v29 }
 0x2f6   :  { %v1260_v42 = vrot.slane %v1259_v41, 1 }
 0x2f8   :  { %v1261_v44 = vadd.f32 %v1260_v42, %v1259_v41 }
 0x2fa   :  { %1478 = vpush %v1261_v44 }
 0x2fb   :  { %1480 = vpush %v1299_v48 }
 0x317   :  { %v1314_v6 = vpop.xlane.xlu0 %1313 }
 0x318   :  { %v1315_v45 = vrot.slane %v1314_v6, 4 }
 0x31a   :  { %v1316_v47 = vadd.f32 %v1315_v45, %v1314_v6 }
 0x31c   :  { %v1317_v39 = vrot.slane %v1316_v47, 2 }
 0x31e   :  { %v1318_v35 = vadd.f32 %v1317_v39, %v1316_v47 }
 0x320   :  { %v1319_v32 = vrot.slane %v1318_v35, 1 }
 0x322   :  { %v1320_v43 = vadd.f32 %v1319_v32, %v1318_v35 }
 0x324   :  { %1482 = vpush %v1320_v43 }
 0x32b   :  { %s1479_s27 = spop %1478 }
 0x32c   :  { %v1263_v50 = vstv %s1479_s27  ;;  %s1481_s28 = spop %1480 }
 0x32d   :  { %v1265_v51 = vmul.f32 0.125, %v1263_v50  ;;  %v1301_v56 = vstv %s1481_s28 }
 0x32e   :  { %v1302_v34 = vmul.f32 0.125, %v1301_v56 }
 0x32f   :  { %v1325_v53 = vmul.f32 0.1, %v1265_v51  ;;  %v1334_v36 = vsel %vm1333_vm9, %v1265_v51, %v1332_v58 }
 0x330   :  { %v1327_v2 = vmul.f32 0.4, %v1302_v34  ;;  %v1336_v60 = vsel %vm1335_vm10, %v1302_v34, %v1334_v36 }
 0x331   :  { %v1326_v63 = vadd.f32 %v1325_v53, %v1324_v57 }
 0x333   :  { %v1328_v3 = vadd.f32 %v1327_v2, %v1326_v63 }
 0x355   :  { %s1483_s29 = spop %1482 }
 0x356   :  { %v1322_v1 = vstv %s1483_s29 }
 0x357   :  { %v1323_v59 = vmul.f32 0.125, %v1322_v1 }
 0x359   :  { %v1329_v4 = vmul.f32 0.4, %v1323_v59  ;;  %v1338_v7 = vsel %vm1337_vm11, %v1323_v59, %v1336_v60 }
 0x35b   :  { %v1330_v5 = vadd.f32 %v1329_v4, %v1328_v3 }
 0x35d   :  { %v1340_v37 = vsel %vm1339_vm12, %v1330_v5, %v1338_v7 }
 0x35e   :  { %1341 = vst [vmem:[#allocation5] sm:$0x1] %v1340_v37 }
 0x35f   :  { %1563 = shalt.err (!%p1560_p12)
}
 0x360   :  { %s1564_s9 = scalar_lea.hbm %s1841_s3, 16 }
 0x361   :  { %p1565_p13 = scmp.ne.s32.totalorder %s1841_s3, %s1564_s9  ;;  %p1568_p0 = scmp.lt.u32.totalorder %s1564_s9, %s1841_s3 }
 0x363   :  { %p1570_p1 = pnand %p1568_p0, %p1565_p13 }
 0x365   :  { %1573 = shalt.err (!%p1570_p1)
}
 0x366   :  { %1351 = dma.vmem_to_hbm [thread:$0]  %s1349_s4, 16, %s1841_s3, [#allocation4]  }
 0x367   :  { %1576 = dma.done.wait [#allocation4], 16  }
 0x368   :  { %1577 = vsyncadd [#allocation4], 4294967280 }
 0x369   :  { %1355 = vsyncpa [#allocation3], 1 }
 0x36a   :  { %1356 = vsyncpa [#allocation4], 1 }

</bundles_post_ra>
